<compile_context>
chip_gen: v6e
topology: v6e:2x2x1
jax: 0.10.0
libtpu: 0.0.40
codegen_flags: <defaults>
</compile_context>

<pallas_src>
import math
import numpy as np
import jax
import jax.numpy as jnp
from jax.experimental import pallas as pl
from jax.experimental.pallas import tpu as pltpu

B, S, D, H, DFF = 2, 8, 32, 4, 64      # batch, seq, d_model, heads, d_ff
DK = D // H
EPS = 1e-6
NEG_INF = -1e9


def _layer_norm(x, a, b):
    # matches torch: mean over last dim, std with Bessel correction (ddof=1)
    mean = jnp.mean(x, axis=-1, keepdims=True)
    var = jnp.sum((x - mean) ** 2, axis=-1, keepdims=True) * (1.0 / (D - 1))
    inv = pl.reciprocal(jnp.sqrt(var) + EPS, approx=False)   # exact: holds 1e-4 tol
    return a * (x - mean) * inv + b


def encoder_layer_kernel(x_ref, mask_ref, pslab_ref, wslab_ref,
                         w1_ref, w2_ref, out_ref):
    x = x_ref[0].astype(jnp.float32)                         # (S, D), one batch

    # ---- unpack the packed parameter slabs (static lane slices of values) ----
    # pslab row 0: [ln1a | ln1b | ln2a | ln2b]            (4*D = 128 lanes)
    # pslab row 1: [bqkv (head-major, q-scaled) | bo]     (3*D + D = 128 lanes)
    # pslab row 2: [b1 | b2 | pad]                        (DFF + D + pad = 128)
    pslab = pslab_ref[...]
    ln1a, ln1b = pslab[0, 0:D], pslab[0, D:2 * D]
    ln2a, ln2b = pslab[0, 2 * D:3 * D], pslab[0, 3 * D:4 * D]
    bqkv, bo = pslab[1, 0:3 * D], pslab[1, 3 * D:4 * D]
    b1, b2 = pslab[2, 0:DFF], pslab[2, DFF:DFF + D]
    # wslab: [wqkv (D, 3D head-major, q-scaled) | wo (D, D)]  -> (D, 4D) = (32,128)
    wslab = wslab_ref[...]
    wqkv, wo = wslab[:, 0:3 * D], wslab[:, 3 * D:4 * D]

    # additive mask bias, computed once (hoisted out of the head loop)
    bias = jnp.where(mask_ref[0] == 0,
                     jnp.float32(NEG_INF), jnp.float32(0.0))  # (S, S)

    # ---- sublayer 1:  x + self_attn(LN(x)) ----
    xn = _layer_norm(x, ln1a, ln1b)
    # fused QKV projection: single (S, D) x (D, 3D) MXU push; 1/sqrt(DK) already
    # folded into the Q columns/bias wrapper-side
    qkv = jnp.dot(xn, wqkv, preferred_element_type=jnp.float32) + bqkv   # (S, 3D)

    heads = []
    for h in range(H):                       # static unroll over heads
        blk = qkv[:, h * 3 * DK:(h + 1) * 3 * DK]     # one contiguous 24-lane slice
        qh, kh, vh = blk[:, 0:DK], blk[:, DK:2 * DK], blk[:, 2 * DK:3 * DK]
        s = jnp.einsum('qd,kd->qk', qh, kh,
                       preferred_element_type=jnp.float32) + bias
        s = s - jnp.max(s, axis=-1, keepdims=True)
        p = jnp.exp(s)
        p = p * pl.reciprocal(jnp.sum(p, axis=-1, keepdims=True), approx=False)
        heads.append(jnp.dot(p, vh, preferred_element_type=jnp.float32))  # (S, DK)

    # lane-concat per-head outputs, then ONE K=D matmul against the full W_O
    ctx = jnp.concatenate(heads, axis=-1)                    # (S, D)
    # TODO(synk): dropout treated as identity (eval / deterministic mode).
    x1 = x + jnp.dot(ctx, wo, preferred_element_type=jnp.float32) + bo

    # ---- sublayer 2:  x1 + FF(LN(x1)) ----
    x1n = _layer_norm(x1, ln2a, ln2b)
    hid = jnp.dot(x1n, w1_ref[...], preferred_element_type=jnp.float32) + b1
    hid = jnp.maximum(hid, 0.0)
    ff = jnp.dot(hid, w2_ref[...], preferred_element_type=jnp.float32) + b2

    out_ref[0] = (x1 + ff).astype(out_ref.dtype)


def encoder_layer(x, mask, p):
    """x: (B,S,D) f32, mask: (B,S,S) int32, p: dict of params."""
    # ---- wrapper-side weight plumbing (static, outside the kernel) ----
    # head-major fused QKV: [q_0|k_0|v_0 | q_1|k_1|v_1 | ...], attention scale
    # folded into the Q columns (and Q bias)
    scale = 1.0 / math.sqrt(DK)
    wcols, bcols = [], []
    for h in range(H):
        sl = slice(h * DK, (h + 1) * DK)
        wcols += [p["wq"][:, sl] * scale, p["wk"][:, sl], p["wv"][:, sl]]
        bcols += [p["bq"][:, sl] * scale, p["bk"][:, sl], p["bv"][:, sl]]
    wqkv = jnp.concatenate(wcols, axis=1)                    # (D, 3D) head-major
    bqkv = jnp.concatenate(bcols, axis=1)                    # (1, 3D)

    # pack the 10 tiny bias/gain operands into one lane-dense (3, 128) slab
    pslab = jnp.concatenate([
        jnp.concatenate([p["ln1a"], p["ln1b"], p["ln2a"], p["ln2b"]], axis=1),
        jnp.concatenate([bqkv, p["bo"]], axis=1),
        jnp.concatenate([p["b1"], p["b2"], jnp.zeros((1, D), jnp.float32)], axis=1),
    ], axis=0)                                               # (3, 4*D) = (3, 128)
    # pack wqkv and wo into one lane-dense (D, 4D) = (32, 128) slab
    wslab = jnp.concatenate([wqkv, p["wo"]], axis=1)

    operands = [x, mask, pslab, wslab, p["w1"], p["w2"]]

    grid_spec = pl.GridSpec(
        # trivial batch grid: on v7x the two batches shard across both
        # TensorCores ("parallel"); weights/params use constant index maps so
        # they are fetched once and stay resident.
        grid=(B,),
        in_specs=[
            pl.BlockSpec((1, S, D), lambda b: (b, 0, 0)),
            pl.BlockSpec((1, S, S), lambda b: (b, 0, 0)),
            pl.BlockSpec((3, 4 * D), lambda b: (0, 0)),
            pl.BlockSpec((D, 4 * D), lambda b: (0, 0)),
            pl.BlockSpec((D, DFF), lambda b: (0, 0)),
            pl.BlockSpec((DFF, D), lambda b: (0, 0)),
        ],
        out_specs=pl.BlockSpec((1, S, D), lambda b: (b, 0, 0)),
    )

    return pl.pallas_call(
        encoder_layer_kernel,
        out_shape=jax.ShapeDtypeStruct((B, S, D), x.dtype),
        grid_spec=grid_spec,
        compiler_params=pltpu.CompilerParams(
            dimension_semantics=("parallel",)),
    )(*operands)


def reference(x, mask, p):
    def ln(t, a, b):
        mean = t.mean(-1, keepdims=True)
        std = jnp.sqrt(((t - mean) ** 2).sum(-1, keepdims=True) / (D - 1))
        return a * (t - mean) / (std + EPS) + b

    xn = ln(x, p["ln1a"][0], p["ln1b"][0])
    q = xn @ p["wq"] + p["bq"][0]
    k = xn @ p["wk"] + p["bk"][0]
    v = xn @ p["wv"] + p["bv"][0]
    qh = q.reshape(B, S, H, DK).transpose(0, 2, 1, 3)
    kh = k.reshape(B, S, H, DK).transpose(0, 2, 1, 3)
    vh = v.reshape(B, S, H, DK).transpose(0, 2, 1, 3)
    scores = jnp.einsum("bhqd,bhkd->bhqk", qh, kh) / math.sqrt(DK)
    scores = jnp.where(mask[:, None, :, :] == 0, -1e9, scores)
    probs = jax.nn.softmax(scores, axis=-1)
    attn = jnp.einsum("bhqk,bhkd->bhqd", probs, vh)
    attn = attn.transpose(0, 2, 1, 3).reshape(B, S, D)
    attn = attn @ p["wo"] + p["bo"][0]
    x1 = x + attn

    x1n = ln(x1, p["ln2a"][0], p["ln2b"][0])
    hid = jnp.maximum(x1n @ p["w1"] + p["b1"][0], 0.0)
    return x1 + hid @ p["w2"] + p["b2"][0]


def make_params(key):
    ks = jax.random.split(key, 6)

    def lin(k, fan_in, fan_out):
        return jax.random.normal(k, (fan_in, fan_out), jnp.float32) / math.sqrt(fan_in)

    return {
        "ln1a": jnp.ones((1, D), jnp.float32),
        "ln1b": jnp.zeros((1, D), jnp.float32),
        "ln2a": jnp.ones((1, D), jnp.float32),
        "ln2b": jnp.zeros((1, D), jnp.float32),
        "wq": lin(ks[0], D, D), "bq": jnp.zeros((1, D), jnp.float32),
        "wk": lin(ks[1], D, D), "bk": jnp.zeros((1, D), jnp.float32),
        "wv": lin(ks[2], D, D), "bv": jnp.zeros((1, D), jnp.float32),
        "wo": lin(ks[3], D, D), "bo": jnp.zeros((1, D), jnp.float32),
        "w1": lin(ks[4], D, DFF), "b1": jnp.zeros((1, DFF), jnp.float32),
        "w2": lin(ks[5], DFF, D), "b2": jnp.zeros((1, D), jnp.float32),
    }


if __name__ == "__main__":
    key = jax.random.PRNGKey(0)
    kx, kp = jax.random.split(key)
    x = jax.random.normal(kx, (B, S, D), jnp.float32)
    # causal mask, broadcast over batch (1 = keep, 0 = masked)
    mask = jnp.broadcast_to(
        jnp.tril(jnp.ones((S, S), jnp.int32)), (B, S, S)).astype(jnp.int32)
    params = make_params(kp)

    out = encoder_layer(x, mask, params)
    out = jax.block_until_ready(out)

    ref = reference(x, mask, params)
    np.testing.assert_allclose(np.asarray(out), np.asarray(ref),
                               rtol=1e-4, atol=1e-4)
    print("KERNEL_OK")
</pallas_src>

<mosaic_0001>
module attributes {stable_mosaic.version = 11 : i64} {
  func.func @encoder_layer_kernel(%arg0: i32, %arg1: memref<1x8x32xf32, #tpu.memory_space<vmem>>, %arg2: memref<1x8x8xi32, #tpu.memory_space<vmem>>, %arg3: memref<3x128xf32, #tpu.memory_space<vmem>>, %arg4: memref<32x128xf32, #tpu.memory_space<vmem>>, %arg5: memref<32x64xf32, #tpu.memory_space<vmem>>, %arg6: memref<64x32xf32, #tpu.memory_space<vmem>>, %arg7: memref<1x8x32xf32, #tpu.memory_space<vmem>>) attributes {dimension_semantics = [#tpu.dimension_semantics<parallel>], iteration_bounds = array<i64: 2>, scalar_prefetch = 0 : i64, scratch_operands = 0 : i64, tpu.core_type = #tpu.core_type<tc>, window_params = [{transform_indices = @transform_0, window_bounds = array<i64: 1, 8, 32>}, {transform_indices = @transform_1, window_bounds = array<i64: 1, 8, 8>}, {pipeline_mode = #tpu.pipeline_mode<synchronous>, transform_indices = @transform_2, window_bounds = array<i64: 3, 128>}, {pipeline_mode = #tpu.pipeline_mode<synchronous>, transform_indices = @transform_3, window_bounds = array<i64: 32, 128>}, {pipeline_mode = #tpu.pipeline_mode<synchronous>, transform_indices = @transform_4, window_bounds = array<i64: 32, 64>}, {pipeline_mode = #tpu.pipeline_mode<synchronous>, transform_indices = @transform_5, window_bounds = array<i64: 64, 32>}, {transform_indices = @transform_6, window_bounds = array<i64: 1, 8, 32>}]} {
    %c0 = arith.constant 0 : index
    %c0_0 = arith.constant 0 : index
    %c0_1 = arith.constant 0 : index
    %0 = vector.load %arg1[%c0, %c0_0, %c0_1] : memref<1x8x32xf32, #tpu.memory_space<vmem>>, vector<1x8x32xf32>
    %1 = vector.shape_cast %0 : vector<1x8x32xf32> to vector<8x32xf32>
    %c0_2 = arith.constant 0 : index
    %c0_3 = arith.constant 0 : index
    %2 = vector.load %arg3[%c0_2, %c0_3] : memref<3x128xf32, #tpu.memory_space<vmem>>, vector<3x128xf32>
    %3 = vector.extract_strided_slice %2 {offsets = [0, 0], sizes = [1, 32], strides = [1, 1]} : vector<3x128xf32> to vector<1x32xf32>
    %4 = vector.shape_cast %3 : vector<1x32xf32> to vector<32xf32>
    %5 = vector.extract_strided_slice %2 {offsets = [0, 32], sizes = [1, 32], strides = [1, 1]} : vector<3x128xf32> to vector<1x32xf32>
    %6 = vector.shape_cast %5 : vector<1x32xf32> to vector<32xf32>
    %7 = vector.extract_strided_slice %2 {offsets = [0, 64], sizes = [1, 32], strides = [1, 1]} : vector<3x128xf32> to vector<1x32xf32>
    %8 = vector.shape_cast %7 : vector<1x32xf32> to vector<32xf32>
    %9 = vector.extract_strided_slice %2 {offsets = [0, 96], sizes = [1, 32], strides = [1, 1]} : vector<3x128xf32> to vector<1x32xf32>
    %10 = vector.shape_cast %9 : vector<1x32xf32> to vector<32xf32>
    %11 = vector.extract_strided_slice %2 {offsets = [1, 0], sizes = [1, 96], strides = [1, 1]} : vector<3x128xf32> to vector<1x96xf32>
    %12 = vector.shape_cast %11 : vector<1x96xf32> to vector<96xf32>
    %13 = vector.extract_strided_slice %2 {offsets = [1, 96], sizes = [1, 32], strides = [1, 1]} : vector<3x128xf32> to vector<1x32xf32>
    %14 = vector.shape_cast %13 : vector<1x32xf32> to vector<32xf32>
    %15 = vector.extract_strided_slice %2 {offsets = [2, 0], sizes = [1, 64], strides = [1, 1]} : vector<3x128xf32> to vector<1x64xf32>
    %16 = vector.shape_cast %15 : vector<1x64xf32> to vector<64xf32>
    %17 = vector.extract_strided_slice %2 {offsets = [2, 64], sizes = [1, 32], strides = [1, 1]} : vector<3x128xf32> to vector<1x32xf32>
    %18 = vector.shape_cast %17 : vector<1x32xf32> to vector<32xf32>
    %c0_4 = arith.constant 0 : index
    %c0_5 = arith.constant 0 : index
    %19 = vector.load %arg4[%c0_4, %c0_5] : memref<32x128xf32, #tpu.memory_space<vmem>>, vector<32x128xf32>
    %20 = vector.extract_strided_slice %19 {offsets = [0, 0], sizes = [32, 96], strides = [1, 1]} : vector<32x128xf32> to vector<32x96xf32>
    %21 = vector.extract_strided_slice %19 {offsets = [0, 96], sizes = [32, 32], strides = [1, 1]} : vector<32x128xf32> to vector<32x32xf32>
    %c0_6 = arith.constant 0 : index
    %c0_7 = arith.constant 0 : index
    %c0_8 = arith.constant 0 : index
    %22 = vector.load %arg2[%c0_6, %c0_7, %c0_8] : memref<1x8x8xi32, #tpu.memory_space<vmem>>, vector<1x8x8xi32>
    %23 = vector.shape_cast %22 : vector<1x8x8xi32> to vector<8x8xi32>
    %c0_i32 = arith.constant 0 : i32
    %24 = vector.broadcast %c0_i32 : i32 to vector<8x8xi32>
    %25 = arith.cmpi eq, %23, %24 : vector<8x8xi32>
    %cst = arith.constant -1.000000e+09 : f32
    %cst_9 = arith.constant 0.000000e+00 : f32
    %26 = vector.broadcast %cst : f32 to vector<8x8xf32>
    %27 = vector.broadcast %cst_9 : f32 to vector<8x8xf32>
    %28 = arith.select %25, %26, %27 : vector<8x8xi1>, vector<8x8xf32>
    %cst_10 = arith.constant dense<0.000000e+00> : vector<8xf32>
    %29 = vector.multi_reduction <add>, %1, %cst_10 [1] : vector<8x32xf32> to vector<8xf32>
    %30 = vector.shape_cast %29 : vector<8xf32> to vector<8x1xf32>
    %cst_11 = arith.constant 3.200000e+01 : f32
    %31 = vector.broadcast %cst_11 : f32 to vector<8x1xf32>
    %32 = arith.divf %30, %31 : vector<8x1xf32>
    %33 = vector.broadcast %32 : vector<8x1xf32> to vector<8x32xf32>
    %34 = arith.subf %1, %33 : vector<8x32xf32>
    %35 = arith.mulf %34, %34 : vector<8x32xf32>
    %cst_12 = arith.constant dense<0.000000e+00> : vector<8xf32>
    %36 = vector.multi_reduction <add>, %35, %cst_12 [1] : vector<8x32xf32> to vector<8xf32>
    %37 = vector.shape_cast %36 : vector<8xf32> to vector<8x1xf32>
    %cst_13 = arith.constant 0.0322580636 : f32
    %38 = vector.broadcast %cst_13 : f32 to vector<8x1xf32>
    %39 = arith.mulf %37, %38 : vector<8x1xf32>
    %40 = math.sqrt %39 : vector<8x1xf32>
    %cst_14 = arith.constant 9.99999997E-7 : f32
    %41 = vector.broadcast %cst_14 : f32 to vector<8x1xf32>
    %42 = arith.addf %40, %41 : vector<8x1xf32>
    %43 = tpu.reciprocal %42 : vector<8x1xf32> -> vector<8x1xf32>
    %44 = vector.broadcast %32 : vector<8x1xf32> to vector<8x32xf32>
    %45 = arith.subf %1, %44 : vector<8x32xf32>
    %46 = vector.shape_cast %4 : vector<32xf32> to vector<1x32xf32>
    %47 = vector.broadcast %46 : vector<1x32xf32> to vector<8x32xf32>
    %48 = arith.mulf %47, %45 : vector<8x32xf32>
    %49 = vector.broadcast %43 : vector<8x1xf32> to vector<8x32xf32>
    %50 = arith.mulf %48, %49 : vector<8x32xf32>
    %51 = vector.shape_cast %6 : vector<32xf32> to vector<1x32xf32>
    %52 = vector.broadcast %51 : vector<1x32xf32> to vector<8x32xf32>
    %53 = arith.addf %50, %52 : vector<8x32xf32>
    %cst_15 = arith.constant dense<0.000000e+00> : vector<8x96xf32>
    %54 = tpu.matmul %53, %20, %cst_15 {dimension_numbers = #tpu.dot_dimension_numbers<[1], [0], [0], [1], [0, 0, 1, 1], [], []>} : vector<8x32xf32>, vector<32x96xf32>, vector<8x96xf32> -> vector<8x96xf32>
    %55 = vector.shape_cast %12 : vector<96xf32> to vector<1x96xf32>
    %56 = vector.broadcast %55 : vector<1x96xf32> to vector<8x96xf32>
    %57 = arith.addf %54, %56 : vector<8x96xf32>
    %58 = vector.extract_strided_slice %57 {offsets = [0, 0], sizes = [8, 24], strides = [1, 1]} : vector<8x96xf32> to vector<8x24xf32>
    %59 = vector.extract_strided_slice %58 {offsets = [0, 0], sizes = [8, 8], strides = [1, 1]} : vector<8x24xf32> to vector<8x8xf32>
    %60 = vector.extract_strided_slice %58 {offsets = [0, 8], sizes = [8, 8], strides = [1, 1]} : vector<8x24xf32> to vector<8x8xf32>
    %61 = vector.extract_strided_slice %58 {offsets = [0, 16], sizes = [8, 8], strides = [1, 1]} : vector<8x24xf32> to vector<8x8xf32>
    "tpu.trace_start"() <{level = 10 : i32, message = "qd,kd->qk"}> : () -> ()
    %cst_16 = arith.constant dense<0.000000e+00> : vector<8x8xf32>
    %62 = tpu.matmul %59, %60, %cst_16 {dimension_numbers = #tpu.dot_dimension_numbers<[1], [1], [0], [0], [0, 0, 1, 0], [], []>} : vector<8x8xf32>, vector<8x8xf32>, vector<8x8xf32> -> vector<8x8xf32>
    "tpu.trace_stop"() : () -> ()
    %63 = arith.addf %62, %28 : vector<8x8xf32>
    %cst_17 = arith.constant dense<0xFF800000> : vector<8xf32>
    %64 = vector.multi_reduction <maximumf>, %63, %cst_17 [1] : vector<8x8xf32> to vector<8xf32>
    %65 = vector.shape_cast %64 : vector<8xf32> to vector<8x1xf32>
    %66 = vector.broadcast %65 : vector<8x1xf32> to vector<8x8xf32>
    %67 = arith.subf %63, %66 : vector<8x8xf32>
    %68 = math.exp %67 : vector<8x8xf32>
    %cst_18 = arith.constant dense<0.000000e+00> : vector<8xf32>
    %69 = vector.multi_reduction <add>, %68, %cst_18 [1] : vector<8x8xf32> to vector<8xf32>
    %70 = vector.shape_cast %69 : vector<8xf32> to vector<8x1xf32>
    %71 = tpu.reciprocal %70 : vector<8x1xf32> -> vector<8x1xf32>
    %72 = vector.broadcast %71 : vector<8x1xf32> to vector<8x8xf32>
    %73 = arith.mulf %68, %72 : vector<8x8xf32>
    %cst_19 = arith.constant dense<0.000000e+00> : vector<8x8xf32>
    %74 = tpu.matmul %73, %61, %cst_19 {dimension_numbers = #tpu.dot_dimension_numbers<[1], [0], [0], [1], [0, 0, 1, 1], [], []>} : vector<8x8xf32>, vector<8x8xf32>, vector<8x8xf32> -> vector<8x8xf32>
    %75 = vector.extract_strided_slice %57 {offsets = [0, 24], sizes = [8, 24], strides = [1, 1]} : vector<8x96xf32> to vector<8x24xf32>
    %76 = vector.extract_strided_slice %75 {offsets = [0, 0], sizes = [8, 8], strides = [1, 1]} : vector<8x24xf32> to vector<8x8xf32>
    %77 = vector.extract_strided_slice %75 {offsets = [0, 8], sizes = [8, 8], strides = [1, 1]} : vector<8x24xf32> to vector<8x8xf32>
    %78 = vector.extract_strided_slice %75 {offsets = [0, 16], sizes = [8, 8], strides = [1, 1]} : vector<8x24xf32> to vector<8x8xf32>
    "tpu.trace_start"() <{level = 10 : i32, message = "qd,kd->qk"}> : () -> ()
    %cst_20 = arith.constant dense<0.000000e+00> : vector<8x8xf32>
    %79 = tpu.matmul %76, %77, %cst_20 {dimension_numbers = #tpu.dot_dimension_numbers<[1], [1], [0], [0], [0, 0, 1, 0], [], []>} : vector<8x8xf32>, vector<8x8xf32>, vector<8x8xf32> -> vector<8x8xf32>
    "tpu.trace_stop"() : () -> ()
    %80 = arith.addf %79, %28 : vector<8x8xf32>
    %cst_21 = arith.constant dense<0xFF800000> : vector<8xf32>
    %81 = vector.multi_reduction <maximumf>, %80, %cst_21 [1] : vector<8x8xf32> to vector<8xf32>
    %82 = vector.shape_cast %81 : vector<8xf32> to vector<8x1xf32>
    %83 = vector.broadcast %82 : vector<8x1xf32> to vector<8x8xf32>
    %84 = arith.subf %80, %83 : vector<8x8xf32>
    %85 = math.exp %84 : vector<8x8xf32>
    %cst_22 = arith.constant dense<0.000000e+00> : vector<8xf32>
    %86 = vector.multi_reduction <add>, %85, %cst_22 [1] : vector<8x8xf32> to vector<8xf32>
    %87 = vector.shape_cast %86 : vector<8xf32> to vector<8x1xf32>
    %88 = tpu.reciprocal %87 : vector<8x1xf32> -> vector<8x1xf32>
    %89 = vector.broadcast %88 : vector<8x1xf32> to vector<8x8xf32>
    %90 = arith.mulf %85, %89 : vector<8x8xf32>
    %cst_23 = arith.constant dense<0.000000e+00> : vector<8x8xf32>
    %91 = tpu.matmul %90, %78, %cst_23 {dimension_numbers = #tpu.dot_dimension_numbers<[1], [0], [0], [1], [0, 0, 1, 1], [], []>} : vector<8x8xf32>, vector<8x8xf32>, vector<8x8xf32> -> vector<8x8xf32>
    %92 = vector.extract_strided_slice %57 {offsets = [0, 48], sizes = [8, 24], strides = [1, 1]} : vector<8x96xf32> to vector<8x24xf32>
    %93 = vector.extract_strided_slice %92 {offsets = [0, 0], sizes = [8, 8], strides = [1, 1]} : vector<8x24xf32> to vector<8x8xf32>
    %94 = vector.extract_strided_slice %92 {offsets = [0, 8], sizes = [8, 8], strides = [1, 1]} : vector<8x24xf32> to vector<8x8xf32>
    %95 = vector.extract_strided_slice %92 {offsets = [0, 16], sizes = [8, 8], strides = [1, 1]} : vector<8x24xf32> to vector<8x8xf32>
    "tpu.trace_start"() <{level = 10 : i32, message = "qd,kd->qk"}> : () -> ()
    %cst_24 = arith.constant dense<0.000000e+00> : vector<8x8xf32>
    %96 = tpu.matmul %93, %94, %cst_24 {dimension_numbers = #tpu.dot_dimension_numbers<[1], [1], [0], [0], [0, 0, 1, 0], [], []>} : vector<8x8xf32>, vector<8x8xf32>, vector<8x8xf32> -> vector<8x8xf32>
    "tpu.trace_stop"() : () -> ()
    %97 = arith.addf %96, %28 : vector<8x8xf32>
    %cst_25 = arith.constant dense<0xFF800000> : vector<8xf32>
    %98 = vector.multi_reduction <maximumf>, %97, %cst_25 [1] : vector<8x8xf32> to vector<8xf32>
    %99 = vector.shape_cast %98 : vector<8xf32> to vector<8x1xf32>
    %100 = vector.broadcast %99 : vector<8x1xf32> to vector<8x8xf32>
    %101 = arith.subf %97, %100 : vector<8x8xf32>
    %102 = math.exp %101 : vector<8x8xf32>
    %cst_26 = arith.constant dense<0.000000e+00> : vector<8xf32>
    %103 = vector.multi_reduction <add>, %102, %cst_26 [1] : vector<8x8xf32> to vector<8xf32>
    %104 = vector.shape_cast %103 : vector<8xf32> to vector<8x1xf32>
    %105 = tpu.reciprocal %104 : vector<8x1xf32> -> vector<8x1xf32>
    %106 = vector.broadcast %105 : vector<8x1xf32> to vector<8x8xf32>
    %107 = arith.mulf %102, %106 : vector<8x8xf32>
    %cst_27 = arith.constant dense<0.000000e+00> : vector<8x8xf32>
    %108 = tpu.matmul %107, %95, %cst_27 {dimension_numbers = #tpu.dot_dimension_numbers<[1], [0], [0], [1], [0, 0, 1, 1], [], []>} : vector<8x8xf32>, vector<8x8xf32>, vector<8x8xf32> -> vector<8x8xf32>
    %109 = vector.extract_strided_slice %57 {offsets = [0, 72], sizes = [8, 24], strides = [1, 1]} : vector<8x96xf32> to vector<8x24xf32>
    %110 = vector.extract_strided_slice %109 {offsets = [0, 0], sizes = [8, 8], strides = [1, 1]} : vector<8x24xf32> to vector<8x8xf32>
    %111 = vector.extract_strided_slice %109 {offsets = [0, 8], sizes = [8, 8], strides = [1, 1]} : vector<8x24xf32> to vector<8x8xf32>
    %112 = vector.extract_strided_slice %109 {offsets = [0, 16], sizes = [8, 8], strides = [1, 1]} : vector<8x24xf32> to vector<8x8xf32>
    "tpu.trace_start"() <{level = 10 : i32, message = "qd,kd->qk"}> : () -> ()
    %cst_28 = arith.constant dense<0.000000e+00> : vector<8x8xf32>
    %113 = tpu.matmul %110, %111, %cst_28 {dimension_numbers = #tpu.dot_dimension_numbers<[1], [1], [0], [0], [0, 0, 1, 0], [], []>} : vector<8x8xf32>, vector<8x8xf32>, vector<8x8xf32> -> vector<8x8xf32>
    "tpu.trace_stop"() : () -> ()
    %114 = arith.addf %113, %28 : vector<8x8xf32>
    %cst_29 = arith.constant dense<0xFF800000> : vector<8xf32>
    %115 = vector.multi_reduction <maximumf>, %114, %cst_29 [1] : vector<8x8xf32> to vector<8xf32>
    %116 = vector.shape_cast %115 : vector<8xf32> to vector<8x1xf32>
    %117 = vector.broadcast %116 : vector<8x1xf32> to vector<8x8xf32>
    %118 = arith.subf %114, %117 : vector<8x8xf32>
    %119 = math.exp %118 : vector<8x8xf32>
    %cst_30 = arith.constant dense<0.000000e+00> : vector<8xf32>
    %120 = vector.multi_reduction <add>, %119, %cst_30 [1] : vector<8x8xf32> to vector<8xf32>
    %121 = vector.shape_cast %120 : vector<8xf32> to vector<8x1xf32>
    %122 = tpu.reciprocal %121 : vector<8x1xf32> -> vector<8x1xf32>
    %123 = vector.broadcast %122 : vector<8x1xf32> to vector<8x8xf32>
    %124 = arith.mulf %119, %123 : vector<8x8xf32>
    %cst_31 = arith.constant dense<0.000000e+00> : vector<8x8xf32>
    %125 = tpu.matmul %124, %112, %cst_31 {dimension_numbers = #tpu.dot_dimension_numbers<[1], [0], [0], [1], [0, 0, 1, 1], [], []>} : vector<8x8xf32>, vector<8x8xf32>, vector<8x8xf32> -> vector<8x8xf32>
    %126 = tpu.concatenate %74, %91, %108, %125 in 1 : vector<8x8xf32>, vector<8x8xf32>, vector<8x8xf32>, vector<8x8xf32> -> vector<8x32xf32>
    %cst_32 = arith.constant dense<0.000000e+00> : vector<8x32xf32>
    %127 = tpu.matmul %126, %21, %cst_32 {dimension_numbers = #tpu.dot_dimension_numbers<[1], [0], [0], [1], [0, 0, 1, 1], [], []>} : vector<8x32xf32>, vector<32x32xf32>, vector<8x32xf32> -> vector<8x32xf32>
    %128 = arith.addf %1, %127 : vector<8x32xf32>
    %129 = vector.shape_cast %14 : vector<32xf32> to vector<1x32xf32>
    %130 = vector.broadcast %129 : vector<1x32xf32> to vector<8x32xf32>
    %131 = arith.addf %128, %130 : vector<8x32xf32>
    %cst_33 = arith.constant dense<0.000000e+00> : vector<8xf32>
    %132 = vector.multi_reduction <add>, %131, %cst_33 [1] : vector<8x32xf32> to vector<8xf32>
    %133 = vector.shape_cast %132 : vector<8xf32> to vector<8x1xf32>
    %cst_34 = arith.constant 3.200000e+01 : f32
    %134 = vector.broadcast %cst_34 : f32 to vector<8x1xf32>
    %135 = arith.divf %133, %134 : vector<8x1xf32>
    %136 = vector.broadcast %135 : vector<8x1xf32> to vector<8x32xf32>
    %137 = arith.subf %131, %136 : vector<8x32xf32>
    %138 = arith.mulf %137, %137 : vector<8x32xf32>
    %cst_35 = arith.constant dense<0.000000e+00> : vector<8xf32>
    %139 = vector.multi_reduction <add>, %138, %cst_35 [1] : vector<8x32xf32> to vector<8xf32>
    %140 = vector.shape_cast %139 : vector<8xf32> to vector<8x1xf32>
    %cst_36 = arith.constant 0.0322580636 : f32
    %141 = vector.broadcast %cst_36 : f32 to vector<8x1xf32>
    %142 = arith.mulf %140, %141 : vector<8x1xf32>
    %143 = math.sqrt %142 : vector<8x1xf32>
    %cst_37 = arith.constant 9.99999997E-7 : f32
    %144 = vector.broadcast %cst_37 : f32 to vector<8x1xf32>
    %145 = arith.addf %143, %144 : vector<8x1xf32>
    %146 = tpu.reciprocal %145 : vector<8x1xf32> -> vector<8x1xf32>
    %147 = vector.broadcast %135 : vector<8x1xf32> to vector<8x32xf32>
    %148 = arith.subf %131, %147 : vector<8x32xf32>
    %149 = vector.shape_cast %8 : vector<32xf32> to vector<1x32xf32>
    %150 = vector.broadcast %149 : vector<1x32xf32> to vector<8x32xf32>
    %151 = arith.mulf %150, %148 : vector<8x32xf32>
    %152 = vector.broadcast %146 : vector<8x1xf32> to vector<8x32xf32>
    %153 = arith.mulf %151, %152 : vector<8x32xf32>
    %154 = vector.shape_cast %10 : vector<32xf32> to vector<1x32xf32>
    %155 = vector.broadcast %154 : vector<1x32xf32> to vector<8x32xf32>
    %156 = arith.addf %153, %155 : vector<8x32xf32>
    %c0_38 = arith.constant 0 : index
    %c0_39 = arith.constant 0 : index
    %157 = vector.load %arg5[%c0_38, %c0_39] : memref<32x64xf32, #tpu.memory_space<vmem>>, vector<32x64xf32>
    %cst_40 = arith.constant dense<0.000000e+00> : vector<8x64xf32>
    %158 = tpu.matmul %156, %157, %cst_40 {dimension_numbers = #tpu.dot_dimension_numbers<[1], [0], [0], [1], [0, 0, 1, 1], [], []>} : vector<8x32xf32>, vector<32x64xf32>, vector<8x64xf32> -> vector<8x64xf32>
    %159 = vector.shape_cast %16 : vector<64xf32> to vector<1x64xf32>
    %160 = vector.broadcast %159 : vector<1x64xf32> to vector<8x64xf32>
    %161 = arith.addf %158, %160 : vector<8x64xf32>
    %cst_41 = arith.constant 0.000000e+00 : f32
    %162 = vector.broadcast %cst_41 : f32 to vector<8x64xf32>
    %163 = arith.maximumf %161, %162 : vector<8x64xf32>
    %c0_42 = arith.constant 0 : index
    %c0_43 = arith.constant 0 : index
    %164 = vector.load %arg6[%c0_42, %c0_43] : memref<64x32xf32, #tpu.memory_space<vmem>>, vector<64x32xf32>
    %cst_44 = arith.constant dense<0.000000e+00> : vector<8x32xf32>
    %165 = tpu.matmul %163, %164, %cst_44 {dimension_numbers = #tpu.dot_dimension_numbers<[1], [0], [0], [1], [0, 0, 1, 1], [], []>} : vector<8x64xf32>, vector<64x32xf32>, vector<8x32xf32> -> vector<8x32xf32>
    %166 = vector.shape_cast %18 : vector<32xf32> to vector<1x32xf32>
    %167 = vector.broadcast %166 : vector<1x32xf32> to vector<8x32xf32>
    %168 = arith.addf %165, %167 : vector<8x32xf32>
    %169 = arith.addf %131, %168 : vector<8x32xf32>
    %c0_45 = arith.constant 0 : index
    %c0_46 = arith.constant 0 : index
    %c0_47 = arith.constant 0 : index
    %170 = vector.load %arg7[%c0_45, %c0_46, %c0_47] : memref<1x8x32xf32, #tpu.memory_space<vmem>>, vector<1x8x32xf32>
    %171 = vector.shape_cast %170 : vector<1x8x32xf32> to vector<8x32xf32>
    %172 = vector.shape_cast %169 : vector<8x32xf32> to vector<1x8x32xf32>
    tpu.vector_store %arg7[%c0_45, %c0_46, %c0_47], %172 {strides = array<i32>} : memref<1x8x32xf32, #tpu.memory_space<vmem>>, vector<1x8x32xf32>,
    return
  }
  func.func @transform_0(%arg0: i32) -> (i32, i32, i32) {
    %c0_i32 = arith.constant 0 : i32
    %c0_i32_0 = arith.constant 0 : i32
    %c0_i32_1 = arith.constant 0 : i32
    return %arg0, %c0_i32, %c0_i32_0 : i32, i32, i32
  }
  func.func @transform_1(%arg0: i32) -> (i32, i32, i32) {
    %c0_i32 = arith.constant 0 : i32
    %c0_i32_0 = arith.constant 0 : i32
    %c0_i32_1 = arith.constant 0 : i32
    return %arg0, %c0_i32, %c0_i32_0 : i32, i32, i32
  }
  func.func @transform_2(%arg0: i32) -> (i32, i32) {
    %c0_i32 = arith.constant 0 : i32
    %c0_i32_0 = arith.constant 0 : i32
    %c0_i32_1 = arith.constant 0 : i32
    return %c0_i32, %c0_i32_0 : i32, i32
  }
  func.func @transform_3(%arg0: i32) -> (i32, i32) {
    %c0_i32 = arith.constant 0 : i32
    %c0_i32_0 = arith.constant 0 : i32
    %c0_i32_1 = arith.constant 0 : i32
    return %c0_i32, %c0_i32_0 : i32, i32
  }
  func.func @transform_4(%arg0: i32) -> (i32, i32) {
    %c0_i32 = arith.constant 0 : i32
    %c0_i32_0 = arith.constant 0 : i32
    %c0_i32_1 = arith.constant 0 : i32
    return %c0_i32, %c0_i32_0 : i32, i32
  }
  func.func @transform_5(%arg0: i32) -> (i32, i32) {
    %c0_i32 = arith.constant 0 : i32
    %c0_i32_0 = arith.constant 0 : i32
    %c0_i32_1 = arith.constant 0 : i32
    return %c0_i32, %c0_i32_0 : i32, i32
  }
  func.func @transform_6(%arg0: i32) -> (i32, i32, i32) {
    %c0_i32 = arith.constant 0 : i32
    %c0_i32_0 = arith.constant 0 : i32
    %c0_i32_1 = arith.constant 0 : i32
    return %arg0, %c0_i32, %c0_i32_0 : i32, i32, i32
  }
}

</mosaic_0001>

<bundles_post_ra>
// kernel: tpu_custom_call.1
= control target key start
LH: loop header
LB: loop body
LE: loop exit
PB: predicated region body
PF: predicated region fallthrough
CT: control target
= control target key end

     0   :  { %11 = vsyncpa [#allocation3], 0  ;;  %s2174_s0 = inlined_call_operand.vmem [shape: f32[2,8,32], index: 0, kind: input, shape index: {}]   ;;  %s2175_s1 = inlined_call_operand.vmem [shape: s32[2,8,8], index: 1, kind: input, shape index: {}]   ;;  %s2176_s2 = inlined_call_operand.hbm [shape: f32[3,128], index: 2, kind: input, shape index: {}]   ;;  %s2177_s3 = inlined_call_operand.vmem [shape: f32[32,128], index: 3, kind: input, shape index: {}]   ;;  %s2178_s4 = inlined_call_operand.vmem [shape: f32[32,64], index: 4, kind: input, shape index: {}]   ;;  %s2179_s5 = inlined_call_operand.vmem [shape: f32[64,32], index: 5, kind: input, shape index: {}]   ;;  %s2180_s6 = inlined_call_operand.hbm [shape: f32[2,8,32], index: 6, kind: output, shape index: {}]  }
   0x1   :  { %12 = vsyncpa [#allocation4], 0 }
   0x2   :  { %14 = vsyncpa [#allocation4 + $0x1], 0  ;;  %s1860_s21 = smov 0   ;;  %s1862_s22 = smov 0  }
   0x3   :  { %s1864_s23 = smov 0   ;;  %s1866_s24 = smov 0  }
   0x4 LB: > { %s1881_s25 = sadd.s32 4294967295, %s1804_s24   ;;  %s1462_s26 = sadd.s32 4294967294, %s1804_s24   ;;  %s1804_s24 = sphi %s1866_s24, %s2188_s24   ;;  %s1800_s23 = sphi %s1864_s23, %s2187_s23   ;;  %s1796_s22 = sphi %s1862_s22, %s2186_s22   ;;  %s1792_s21 = sphi %s1860_s21, %s2185_s21  }
   0x5   : > { %s1885_s27 = sadd.s32 1, %s1804_s24   ;;  %s163_s28 = sadd.s32 1, %s1800_s23 }
   0x6   : > { %s160_s29 = ssub.s32 %s1804_s24, %s1885_s27  ;;  %p173_p0 = scmp.ne.s32.totalorder %s1800_s23, %s1796_s22 }
   0x7   : > { %p161_p1 = scmp.eq.s32.totalorder %s160_s29, 0  ;;  %p174_p2 = scmp.eq.s32.totalorder %s1881_s25, 1 }
   0x8   : > { %p179_p3 = scmp.ne.s32.totalorder %s1796_s22, %s1792_s21  ;;  %p180_p4 = scmp.eq.s32.totalorder %s1462_s26, 1 }
   0x9   : > { %s1896_s30 = scalar_select %p161_p1, %s1800_s23, %s163_s28  }
   0xa   : > { %p1898_p5 = por %p174_p2, %p173_p0  ;;  %p1902_p6 = por %p180_p4, %p179_p3 }
   0xb   : > { %p1463_p7 = scmp.ge.s32.totalorder %s1804_s24, 1  ;;  %p187_p8 = scmp.lt.s32.totalorder %s1804_s24, 3 }
   0xc   : > { %s2182_s8 = scalar_select %p1902_p6, 1, 0 }
   0xd   : > { %p1637_p9 = scmp.eq.s32.totalorder %s1881_s25, 0  ;;  %p1909_p10 = pnand %p1463_p7, %p187_p8 }
   0xe   : > { %s1806_s10 = smov [#allocation2]  }
   0xf   : > { %s200_s11 = sshll.u32 %s1806_s10, 4  ;;  %p1629_p11 = pneg %p1909_p10  ;;  %s201_s11 = int_to_ptr.vmem [resolvable:$true] %s200_s11 }
  0x10   : > { %s1725_s12 = scalar_lea.vmem %s201_s11, 64  ;;  %p1733_p3 = scmp.lt.s32.totalorder %s201_s11, %s201_s11 }
  0x11   : > { %p1630_p12 = pnand %p1637_p9, %p1629_p11  ;;  %p1726_p0 = scmp.ne.s32.totalorder %s201_s11, %s1725_s12 }
  0x12   : > { %p1734_p4 = scmp.lt.s32.totalorder %s1725_s12, %s1725_s12 }
  0x13   : > { %p1716_p13 = pneg %p1630_p12 }
  0x14   : > { %p1735_p6 = por %p1734_p4, %p1733_p3 }
  0x15   : > { %p1728_p1 = pnand %p1726_p0, %p1716_p13 }
  0x17   : > { %p1729_p2 = pneg %p1728_p1 }
  0x19   : > { %p1736_p7 = pnand %p1735_p6, %p1729_p2 }
  0x1b   : > { %1739 = shalt.err (!%p1736_p7)
}
  0x1c   : > { %1632 = dma.hbm_to_vmem [thread:$0]  (!%p1630_p12), %s2176_s2, 64, %s201_s11, [#allocation3]  }
  0x1d   : > { %236 = sbr.rel (%p1909_p10) target bundleno = 2595 (0xa23), region = 44 }
  0x22   : > { %1783 = dma.done.wait (%p1637_p9), [#allocation3], 64  }
  0x23   : > { %1785 = vsyncadd (%p1637_p9), [#allocation3], 4294967232  ;;  %p269_p8 = scmp.lt.s32.totalorder %s1881_s25, 1  ;;  %vm286_vm0 = vcmask 261120   ;;  %v307_v2 = vlaneseq  ;;  %v1943_v5 = vld [vmem:[#allocation2] sm:$0x7] }
  0x24   : > { %s1807_s20 = smov 96   ;;  %v1955_v12 = vld [vmem:[%s2177_s3 + $0x18] sm:$0xff]  ;;  %v1808_v13 = vmov 0.0   ;;  %v1961_v14 = vld [vmem:[%s2177_s3 + $0x10] sm:$0xff]  ;;  %v1969_v15 = vld [vmem:[%s2177_s3 + $0x8] sm:$0xff]  ;;  %vm1809_vm1 = vmmov 0  }
  0x25   : > { %s1928_s15 = scalar_select %p269_p8, %s1881_s25, 1  ;;  %v1940_v3 = vshrl.u32 %v307_v2, 7  ;;  %1531 = vmatprep.subr.mxu1 %v1808_v13  ;;  %1552 = vmatprep.subr.mxu0 %v1808_v13  ;;  %v1978_v16 = vld [vmem:[%s2177_s3] sm:$0xff]  ;;  %vm398_vm4 = vcmask 64512   ;;  %vm1068_vm6 = vcmask 130048   ;;  %vm1070_vm7 = vcmask 195584  }
  0x26   : > { %1532 = vmatpush3.msra.mxu1 %v1955_v12  ;;  %1539 = vmatprep.mubr.msk.f32.mxu1 %vm1809_vm1, %v1808_v13  ;;  %s1810_s14 = smov 120   ;;  %s1811_s17 = smov 104   ;;  %vm1289_vm10 = vcmask 523264  }
  0x27   : > { %s1469_s16 = sshll.u32 %s1928_s15, 3  ;;  %v309_v4 = vsub.s32 0, %v1940_v3  ;;  %1533 = vmatprep.subr.mxu1 %v1808_v13  ;;  %1554 = vmatprep.mubr.msk.f32.mxu0 %vm1809_vm1, %v1808_v13  ;;  %v320_v30 = vsub.s32 1, %v1940_v3  ;;  %s1812_s18 = smov 72  }
  0x28   : > { %s272_s19 = scalar_lea.vmem %s2174_s0, %s1469_s16  ;;  %1534 = vmatpush3.msra.mxu1 %v1961_v14  ;;  %s1814_s26 = smov 48  }
  0x29   : > { %v1936_v0 = vld [vmem:[%s272_s19] sm:$0xff]  ;;  %v1946_v6 = vrot.slane %v1943_v5, %v309_v4  ;;  %1535 = vmatprep.subr.mxu1 %v1808_v13  ;;  %v1995_v31 = vrot.slane %v1943_v5, %v320_v30  ;;  %s1813_s19 = smov 80   ;;  %s1815_s28 = smov 56  }
  0x2a   : > { %v287_v1 = vsel %vm286_vm0, %v1936_v0, 0.0  ;;  %1536 = vmatpush3.msra.mxu1 %v1969_v15  ;;  %s276_s9 = scalar_lea.vmem %s2175_s1, %s1469_s16  ;;  %s1816_s15 = smov 88  }
  0x2b   : > { %288 = vadd.xlane.f32.xlu0 %v287_v1  ;;  %314 = vrot.lane.b32.xlu1 %v1946_v6, %s1807_s20  ;;  %v283_v42 = vld [vmem:[%s276_s9] sm:$0xff]  ;;  %s1817_s16 = smov 112   ;;  %s1818_s10 = smov 64  }
  0x2c   : > { %1537 = vmatprep.subr.mxu1 %v1808_v13  ;;  %vm284_vm5 = vcmp.eq.s32.totalorder %v283_v42, 0  ;;  %s1819_s11 = smov 40   ;;  %s1820_s12 = smov 32  }
  0x2d   : > { %1538 = vmatpush3.msra.mxu1 %v1978_v16  ;;  %v285_v43 = vsel %vm284_vm5, -1e+09, %v1808_v13  ;;  %s1821_s13 = smov 8  }
  0x2e   : > { %1542 = vmatprep.subr.mxu1 %v1808_v13 }
  0x9d   : > { %v1987_v27 = vpop.permute.xlu1 %314 }
  0xb4   : > { %v289_v7 = vpop.xlane.xlu0 %288 }
  0xb5   : > { %v291_v8 = vmul.f32 0.03125, %v289_v7 }
  0xb7   : > { %v292_v9 = vsub.f32 %v1936_v0, %v291_v8 }
  0xb9   : > { %v293_v10 = vmul.f32 %v292_v9, %v292_v9  ;;  %v311_v25 = vmul.f32 %v1946_v6, %v292_v9 }
  0xbb   : > { %v294_v11 = vsel %vm286_vm0, %v293_v10, 0.0 }
  0xbc   : > { %295 = vadd.xlane.f32.xlu0 %v294_v11 }
 0x145   : > { %v296_v17 = vpop.xlane.xlu0 %295 }
 0x146   : > { %v297_v18 = vmul.f32 0.032258064, %v296_v17 }
 0x148   : > { %1690 = vrsqrt.f32 %v297_v18  ;;  %vm300_vm2 = vcmp.eq.f32.partialorder %v297_v18, inf  ;;  %v303_v21 = vand.u32 2147483648, %v297_v18  ;;  %vm302_vm3 = vcmp.eq.f32.partialorder %v297_v18, 0.0 }
 0x155   : > { %v1691_v19 = vpop.eup %1690 }
 0x156   : > { %v299_v20 = vmul.f32 %v1691_v19, %v297_v18 }
 0x158   : > { %v301_v22 = vsel %vm300_vm2, %v297_v18, %v299_v20 }
 0x159   : > { %v304_v23 = vsel %vm302_vm3, %v303_v21, %v301_v22 }
 0x15a   : > { %v305_v24 = vadd.f32 1e-06, %v304_v23 }
 0x15c   : > { %1692 = vrcp.f32 %v305_v24 }
 0x169   : > { %v1693_v26 = vpop.eup %1692 }
 0x16a   : > { %v312_v28 = vmul.f32 %v1693_v26, %v311_v25 }
 0x16c   : > { %v317_v29 = vadd.f32 %v1987_v27, %v312_v28 }
 0x16e   : > { %1540 = vmatmul.mubr.msk.f32.vlgmr.msra.gmra.mxu1 %vm286_vm0, %v317_v29 }
 0x16f   : > { %1544 = vmatprep.mubr.msk.f32.mxu1 %vm1809_vm1, %v1808_v13 }
 0x22e   : > { %v391_v32 = vpop.f32.mrf.mxu1 }
 0x22f   : > { %v1998_v33 = vadd.f32 %v391_v32, %v1995_v31 }
 0x230   : > { %v1541_v34 = vpop.f32.mrf.mxu1 }
 0x231   : > { %562 = vrot.lane.b32.xlu0 %v1998_v33, %s1807_s20  ;;  %396 = vrot.lane.b32.xlu1 %v1998_v33, %s1810_s14  ;;  %s1822_s14 = smov 16  }
 0x235   : > { %560 = vrot.lane.b32.xlu1 %v1998_v33, %s1811_s17  ;;  %s1823_s17 = smov 24  }
 0x239   : > { %727 = vrot.lane.b32.xlu1 %v1998_v33, %s1812_s18 }
 0x23d   : > { %725 = vrot.lane.b32.xlu1 %v1998_v33, %s1813_s19 }
 0x241   : > { %892 = vrot.lane.b32.xlu1 %v1998_v33, %s1814_s26 }
 0x245   : > { %890 = vrot.lane.b32.xlu1 %v1998_v33, %s1815_s28 }
 0x2a3   : > { %v563_v35 = vpop.permute.xlu0 %562  ;;  %v397_v36 = vpop.permute.xlu1 %396 }
 0x2a4   : > { %1543 = vmatpush3.xpose.msk.msra.mxu1 %vm398_vm4, %v397_v36  ;;  %1553 = vmatpush3.xpose.msk.msra.mxu0 %vm398_vm4, %v563_v35 }
 0x2a5   : > { %1562 = vmatprep.subr.mxu0 %v1808_v13  ;;  %1547 = vmatprep.subr.mxu1 %v1808_v13 }
 0x2a7   : > { %1545 = vmatmul.mubr.msk.f32.vlgmr.msra.gmra.mxu1 %vm398_vm4, %v1998_v33  ;;  %v561_v37 = vpop.permute.xlu1 %560 }
 0x2a8   : > { %1555 = vmatmul.mubr.msk.f32.vlgmr.msra.gmra.mxu0 %vm398_vm4, %v561_v37  ;;  %1549 = vmatprep.mubr.msk.f32.mxu1 %vm1809_vm1, %v1808_v13 }
 0x2a9   : > { %1564 = vmatprep.mubr.msk.f32.mxu0 %vm1809_vm1, %v1808_v13 }
 0x2ab   : > { %v728_v38 = vpop.permute.xlu1 %727 }
 0x2ac   : > { %1563 = vmatpush3.xpose.msk.msra.mxu0 %vm398_vm4, %v728_v38 }
 0x2ad   : > { %1572 = vmatprep.subr.mxu0 %v1808_v13 }
 0x2af   : > { %v726_v39 = vpop.permute.xlu1 %725 }
 0x2b0   : > { %1565 = vmatmul.mubr.msk.f32.vlgmr.msra.gmra.mxu0 %vm398_vm4, %v726_v39 }
 0x2b1   : > { %1574 = vmatprep.mubr.msk.f32.mxu0 %vm1809_vm1, %v1808_v13 }
 0x2b3   : > { %v893_v40 = vpop.permute.xlu1 %892 }
 0x2b4   : > { %1573 = vmatpush3.xpose.msk.msra.mxu0 %vm398_vm4, %v893_v40 }
 0x2b5   : > { %1582 = vmatprep.subr.mxu0 %v1808_v13 }
 0x2b7   : > { %v891_v41 = vpop.permute.xlu1 %890 }
 0x2b8   : > { %1575 = vmatmul.mubr.msk.f32.vlgmr.msra.gmra.mxu0 %vm398_vm4, %v891_v41 }
 0x2b9   : > { %1590 = vmatprep.mubr.msk.f32.mxu0 %vm1809_vm1, %v1808_v13 }
 0x367   : > { %v469_v44 = vpop.f32.mrf.mxu1 }
 0x368   : > { %v470_v45 = vadd.f32 %v469_v44, %v285_v43  ;;  %v634_v46 = vpop.f32.mrf.mxu0 }
 0x369   : > { %v635_v47 = vadd.f32 %v634_v46, %v285_v43  ;;  %v1546_v48 = vpop.f32.mrf.mxu1 }
 0x36a   : > { %v1556_v49 = vpop.f32.mrf.mxu0  ;;  %v473_v50 = vsel %vm398_vm4, %v470_v45, -inf }
 0x36b   : > { %474 = vmax.xlane.f32.xlu1 %v473_v50  ;;  %v638_v51 = vsel %vm398_vm4, %v635_v47, -inf }
 0x36c   : > { %639 = vmax.xlane.f32.xlu0 %v638_v51 }
 0x370   : > { %v799_v52 = vpop.f32.mrf.mxu0 }
 0x371   : > { %v800_v53 = vadd.f32 %v799_v52, %v285_v43 }
 0x372   : > { %v1566_v54 = vpop.f32.mrf.mxu0 }
 0x373   : > { %v803_v55 = vsel %vm398_vm4, %v800_v53, -inf }
 0x374   : > { %804 = vmax.xlane.f32.xlu0 %v803_v55 }
 0x378   : > { %v964_v56 = vpop.f32.mrf.mxu0 }
 0x379   : > { %v965_v57 = vadd.f32 %v964_v56, %v285_v43 }
 0x37a   : > { %v1576_v58 = vpop.f32.mrf.mxu0 }
 0x37b   : > { %v968_v59 = vsel %vm398_vm4, %v965_v57, -inf }
 0x37c   : > { %969 = vmax.xlane.f32.xlu1 %v968_v59 }
 0x38d   : > { %649 = vrot.lane.b32.xlu1 %v1998_v33, %s1816_s15 }
 0x3f4   : > { %v475_v60 = vpop.xlane.xlu1 %474 }
 0x3f5   : > { %v476_v61 = vsub.f32 %v470_v45, %v475_v60  ;;  %v640_v62 = vpop.xlane.xlu0 %639 }
 0x3f6   : > { %v641_v63 = vsub.f32 %v635_v47, %v640_v62 }
 0x3f7   : > { %v477_v1 = vmul.f32 1.442695, %v476_v61 }
 0x3f8   : > { %v642_v2 = vmul.f32 1.442695, %v641_v63 }
 0x3f9   : > { %1694 = vpow2.f32 %v477_v1 }
 0x3fa   : > { %1696 = vpow2.f32 %v642_v2 }
 0x3fd   : > { %v805_v20 = vpop.xlane.xlu0 %804 }
 0x3fe   : > { %v806_v21 = vsub.f32 %v800_v53, %v805_v20 }
 0x400   : > { %v807_v22 = vmul.f32 1.442695, %v806_v21 }
 0x405   : > { %v970_v4 = vpop.xlane.xlu1 %969 }
 0x406   : > { %v1695_v7 = vpop.eup %1694  ;;  %v971_v8 = vsub.f32 %v965_v57, %v970_v4 }
 0x407   : > { %v1697_v9 = vpop.eup %1696  ;;  %v479_v10 = vsel %vm398_vm4, %v1695_v7, 0.0 }
 0x408   : > { %v972_v11 = vmul.f32 1.442695, %v971_v8  ;;  %480 = vadd.xlane.f32.xlu0 %v479_v10  ;;  %v644_v17 = vsel %vm398_vm4, %v1697_v9, 0.0  ;;  %v1194_v8 = vld [vmem:[%s2178_s4 + $0x8] sm:$0xff] }
 0x409   : > { %645 = vadd.xlane.f32.xlu1 %v644_v17  ;;  %v650_v25 = vpop.permute.xlu1 %649 }
 0x40a   : > { %1698 = vpow2.f32 %v972_v11 }
 0x40b   : > { %1700 = vpow2.f32 %v807_v22 }
 0x417   : > { %v1699_v18 = vpop.eup %1698 }
 0x418   : > { %v974_v19 = vsel %vm398_vm4, %v1699_v18, 0.0  ;;  %v1701_v23 = vpop.eup %1700 }
 0x419   : > { %975 = vadd.xlane.f32.xlu1 %v974_v19  ;;  %v809_v24 = vsel %vm398_vm4, %v1701_v23, 0.0 }
 0x41e   : > { %484 = vrot.lane.b32.xlu0 %v1998_v33, %s1817_s16 }
 0x42a   : > { %814 = vrot.lane.b32.xlu1 %v1998_v33, %s1818_s10 }
 0x42e   : > { %1082 = vrot.lane.b32.xlu1 %v1955_v12, %s1820_s12 }
 0x43d   : > { %810 = vadd.xlane.f32.xlu0 %v809_v24  ;;  %v1283_v24 = vld [vmem:[%s2179_s5 + $0x30] sm:$0xff] }
 0x453   : > { %979 = vrot.lane.b32.xlu0 %v1998_v33, %s1819_s11 }
 0x457   : > { %1080 = vrot.lane.b32.xlu0 %v1961_v14, %s1820_s12 }
 0x45b   : > { %1078 = vrot.lane.b32.xlu0 %v1969_v15, %s1820_s12 }
 0x491   : > { %v481_v26 = vpop.xlane.xlu0 %480 }
 0x492   : > { %1702 = vrcp.f32 %v481_v26  ;;  %v646_v28 = vpop.xlane.xlu1 %645 }
 0x493   : > { %1704 = vrcp.f32 %v646_v28  ;;  %v1281_v28 = vld [vmem:[%s2179_s5 + $0x20] sm:$0xff] }
 0x495   : > { %v485_v29 = vpop.permute.xlu0 %484 }
 0x496   : > { %1548 = vmatpush3.msra.mxu1 %v485_v29  ;;  %v1280_v29 = vld [vmem:[%s2179_s5 + $0x18] sm:$0xff] }
 0x497   : > { %1557 = vmatprep.subr.mxu1 %v1808_v13 }
 0x49f   : > { %v1703_v30 = vpop.eup %1702 }
 0x4a0   : > { %v483_v32 = vmul.f32 %v1703_v30, %v1695_v7  ;;  %v1705_v34 = vpop.eup %1704  ;;  %v1195_v7 = vld [vmem:[%s2178_s4 + $0x10] sm:$0xff] }
 0x4a1   : > { %v648_v33 = vmul.f32 %v1705_v34, %v1697_v9  ;;  %v1193_v9 = vld [vmem:[%s2178_s4] sm:$0xff] }
 0x4a2   : > { %1550 = vmatmul.mubr.msk.f32.vlgmr.msra.gmra.mxu1 %vm398_vm4, %v483_v32  ;;  %v976_v35 = vpop.xlane.xlu1 %975 }
 0x4a3   : > { %1558 = vmatpush3.msra.mxu1 %v650_v25  ;;  %1559 = vmatprep.mubr.msk.f32.mxu1 %vm1809_vm1, %v1808_v13  ;;  %v1282_v25 = vld [vmem:[%s2179_s5 + $0x28] sm:$0xff] }
 0x4a4   : > { %1567 = vmatprep.subr.mxu1 %v1808_v13 }
 0x4a6   : > { %1560 = vmatmul.mubr.msk.f32.vlgmr.msra.gmra.mxu1 %vm398_vm4, %v648_v33  ;;  %v815_v36 = vpop.permute.xlu1 %814  ;;  %v1199_v33 = vsub.s32 2, %v1940_v3  ;;  %v1278_v3 = vld [vmem:[%s2179_s5 + $0x8] sm:$0xff] }
 0x4a7   : > { %1568 = vmatpush3.msra.mxu1 %v815_v36  ;;  %1569 = vmatprep.mubr.msk.f32.mxu1 %vm1809_vm1, %v1808_v13 }
 0x4a8   : > { %1577 = vmatprep.subr.mxu1 %v1808_v13  ;;  %v1200_v36 = vrot.slane %v1943_v5, %v1199_v33  ;;  %v1277_v5 = vld [vmem:[%s2179_s5] sm:$0xff] }
 0x4aa   : > { %v1083_v43 = vpop.permute.xlu1 %1082 }
 0x4ab   : > { %1583 = vmatpush3.msra.mxu0 %v1083_v43 }
 0x4ac   : > { %1584 = vmatprep.subr.mxu0 %v1808_v13 }
 0x4c6   : > { %v811_v37 = vpop.xlane.xlu0 %810 }
 0x4c7   : > { %1706 = vrcp.f32 %v811_v37 }
 0x4c8   : > { %1708 = vrcp.f32 %v976_v35 }
 0x4ca   : > { %v980_v41 = vpop.permute.xlu0 %979 }
 0x4ce   : > { %v1081_v44 = vpop.permute.xlu0 %1080 }
 0x4cf   : > { %1585 = vmatpush3.msra.mxu0 %v1081_v44 }
 0x4d0   : > { %1586 = vmatprep.subr.mxu0 %v1808_v13 }
 0x4d2   : > { %v1079_v45 = vpop.permute.xlu0 %1078 }
 0x4d3   : > { %1587 = vmatpush3.msra.mxu0 %v1079_v45 }
 0x4d4   : > { %v1707_v38 = vpop.eup %1706  ;;  %1588 = vmatprep.subr.mxu0 %v1808_v13 }
 0x4d5   : > { %v813_v39 = vmul.f32 %v1707_v38, %v1701_v23  ;;  %v1709_v40 = vpop.eup %1708  ;;  %v1284_v23 = vld [vmem:[%s2179_s5 + $0x38] sm:$0xff] }
 0x4d6   : > { %v978_v42 = vmul.f32 %v1709_v40, %v1699_v18 }
 0x4d7   : > { %1570 = vmatmul.mubr.msk.f32.vlgmr.msra.gmra.mxu1 %vm398_vm4, %v813_v39 }
 0x4d8   : > { %1578 = vmatpush3.msra.mxu1 %v980_v41  ;;  %1579 = vmatprep.mubr.msk.f32.mxu1 %vm1809_vm1, %v1808_v13 }
 0x4d9   : > { %1593 = vmatprep.subr.mxu1 %v1808_v13 }
 0x4db   : > { %1580 = vmatmul.mubr.msk.f32.vlgmr.msra.gmra.mxu1 %vm398_vm4, %v978_v42 }
 0x4dc   : > { %1601 = vmatprep.mubr.msk.f32.mxu1 %vm1809_vm1, %v1808_v13 }
 0x562   : > { %v556_v46 = vpop.f32.mrf.mxu1 }
 0x564   : > { %v1551_v47 = vpop.f32.mrf.mxu1 }
 0x566   : > { %v721_v48 = vpop.f32.mrf.mxu1 }
 0x567   : > { %1056 = vrot.lane.b32.xlu1 %v721_v48, %s1821_s13  ;;  %s1488_s13 = sshll.u32 %s1881_s25, 7  ;;  %s1824_s25 = smov [#allocation5]  }
 0x568   : > { %v1561_v12 = vpop.f32.mrf.mxu1  ;;  %s1377_s26 = scalar_lea.hbm %s2180_s6, %s1488_s13  ;;  %s1744_s29 = sshll.u32 %s1824_s25, 4  ;;  %s1745_s29 = int_to_ptr.vmem [resolvable:$false] %s1744_s29 }
 0x569   : > { %s1746_s9 = scalar_lea.vmem %s1745_s29, 256 }
 0x597   : > { %v886_v14 = vpop.f32.mrf.mxu1 }
 0x598   : > { %1060 = vrot.lane.b32.xlu1 %v886_v14, %s1822_s14 }
 0x599   : > { %v1571_v15 = vpop.f32.mrf.mxu1 }
 0x59b   : > { %v1051_v49 = vpop.f32.mrf.mxu1 }
 0x59c   : > { %1076 = vrot.lane.b32.xlu1 %v1978_v16, %s1820_s12  ;;  %1064 = vrot.lane.b32.xlu0 %v1051_v49, %s1823_s17 }
 0x59d   : > { %v1581_v50 = vpop.f32.mrf.mxu1 }
 0x5a0   : > { %1163 = vrot.lane.b32.xlu0 %v1995_v31, %s1820_s12 }
 0x5d9   : > { %v1057_v51 = vpop.permute.xlu1 %1056 }
 0x5da   : > { %v1067_v53 = vsel %vm398_vm4, %v556_v46, %v1057_v51 }
 0x60a   : > { %v1061_v52 = vpop.permute.xlu1 %1060 }
 0x60b   : > { %v1069_v54 = vsel %vm1068_vm6, %v1067_v53, %v1061_v52 }
 0x60e   : > { %v1077_v55 = vpop.permute.xlu1 %1076  ;;  %v1065_v56 = vpop.permute.xlu0 %1064 }
 0x60f   : > { %v1071_v57 = vsel %vm1070_vm7, %v1069_v54, %v1065_v56  ;;  %1589 = vmatpush3.msra.mxu0 %v1077_v55 }
 0x610   : > { %1591 = vmatmul.mubr.msk.f32.vlgmr.msra.gmra.mxu0 %vm286_vm0, %v1071_v57  ;;  %1604 = vmatprep.subr.mxu0 %v1808_v13 }
 0x611   : > { %1620 = vmatprep.mubr.msk.f32.mxu0 %vm1809_vm1, %v1808_v13  ;;  %1605 = vmatpush3.msra.mxu0 %v1284_v23 }
 0x612   : > { %v1164_v31 = vpop.permute.xlu0 %1163  ;;  %1606 = vmatprep.subr.mxu0 %v1808_v13 }
 0x613   : > { %1607 = vmatpush3.msra.mxu0 %v1283_v24 }
 0x614   : > { %1608 = vmatprep.subr.mxu0 %v1808_v13 }
 0x615   : > { %1609 = vmatpush3.msra.mxu0 %v1282_v25 }
 0x616   : > { %1610 = vmatprep.subr.mxu0 %v1808_v13 }
 0x617   : > { %1611 = vmatpush3.msra.mxu0 %v1281_v28 }
 0x618   : > { %1612 = vmatprep.subr.mxu0 %v1808_v13 }
 0x619   : > { %1613 = vmatpush3.msra.mxu0 %v1280_v29 }
 0x61a   : > { %1614 = vmatprep.subr.mxu0 %v1808_v13 }
 0x6d0   : > { %v1157_v16 = vpop.f32.mrf.mxu0 }
 0x6d1   : > { %v1161_v58 = vadd.f32 %v1157_v16, %v1936_v0  ;;  %v1196_v0 = vld [vmem:[%s2178_s4 + $0x18] sm:$0xff] }
 0x6d2   : > { %v1592_v59 = vpop.f32.mrf.mxu0  ;;  %1594 = vmatpush3.msra.mxu1 %v1196_v0 }
 0x6d3   : > { %v2078_v60 = vadd.f32 %v1164_v31, %v1161_v58  ;;  %1595 = vmatprep.subr.mxu1 %v1808_v13 }
 0x6d4   : > { %1596 = vmatpush3.msra.mxu1 %v1195_v7 }
 0x6d5   : > { %v1167_v61 = vsel %vm286_vm0, %v2078_v60, 0.0  ;;  %1597 = vmatprep.subr.mxu1 %v1808_v13 }
 0x6d6   : > { %1168 = vadd.xlane.f32.xlu1 %v1167_v61  ;;  %1598 = vmatpush3.msra.mxu1 %v1194_v8 }
 0x6d7   : > { %1599 = vmatprep.subr.mxu1 %v1808_v13 }
 0x6d8   : > { %1600 = vmatpush3.msra.mxu1 %v1193_v9 }
 0x75f   : > { %v1169_v62 = vpop.xlane.xlu1 %1168 }
 0x760   : > { %v1170_v63 = vmul.f32 0.03125, %v1169_v62 }
 0x762   : > { %v1171_v1 = vsub.f32 %v2078_v60, %v1170_v63 }
 0x764   : > { %v1172_v2 = vmul.f32 %v1171_v1, %v1171_v1 }
 0x766   : > { %v1173_v4 = vsel %vm286_vm0, %v1172_v2, 0.0 }
 0x767   : > { %1174 = vadd.xlane.f32.xlu0 %v1173_v4 }
 0x77d   : > { %1187 = vrot.lane.b32.xlu0 %v1171_v1, %s1818_s10 }
 0x7f0   : > { %v1175_v10 = vpop.xlane.xlu0 %1174 }
 0x7f1   : > { %v1176_v11 = vmul.f32 0.032258064, %v1175_v10 }
 0x7f3   : > { %1710 = vrsqrt.f32 %v1176_v11  ;;  %vm1179_vm8 = vcmp.eq.f32.partialorder %v1176_v11, inf  ;;  %v1182_v19 = vand.u32 2147483648, %v1176_v11  ;;  %vm1181_vm9 = vcmp.eq.f32.partialorder %v1176_v11, 0.0 }
 0x7f4   : > { %v1188_v26 = vpop.permute.xlu0 %1187 }
 0x7f5   : > { %v1190_v30 = vmul.f32 %v1188_v26, %v1946_v6  ;;  %v1279_v6 = vld [vmem:[%s2179_s5 + $0x10] sm:$0xff] }
 0x7f6   : > { %1615 = vmatpush3.msra.mxu0 %v1279_v6 }
 0x7f7   : > { %1616 = vmatprep.subr.mxu0 %v1808_v13 }
 0x7f8   : > { %1617 = vmatpush3.msra.mxu0 %v1278_v3 }
 0x7f9   : > { %1618 = vmatprep.subr.mxu0 %v1808_v13 }
 0x7fa   : > { %1619 = vmatpush3.msra.mxu0 %v1277_v5 }
 0x800   : > { %v1711_v17 = vpop.eup %1710 }
 0x801   : > { %v1178_v18 = vmul.f32 %v1711_v17, %v1176_v11 }
 0x803   : > { %v1180_v20 = vsel %vm1179_vm8, %v1176_v11, %v1178_v18 }
 0x804   : > { %v1183_v21 = vsel %vm1181_vm9, %v1182_v19, %v1180_v20 }
 0x805   : > { %v1184_v22 = vadd.f32 1e-06, %v1183_v21 }
 0x807   : > { %1712 = vrcp.f32 %v1184_v22 }
 0x814   : > { %v1713_v32 = vpop.eup %1712 }
 0x815   : > { %v1191_v34 = vmul.f32 %v1713_v32, %v1190_v30 }
 0x817   : > { %v1192_v35 = vadd.f32 %v1191_v34, %v1987_v27 }
 0x819   : > { %1202 = vrot.lane.b32.xlu1 %v1192_v35, %s1818_s10 }
 0x81d   : > { %1286 = vrot.lane.b32.xlu1 %v1200_v36, %s1818_s10  ;;  %s266_s10 = sand.u32 1, %s1796_s22  }
 0x81e   : > { %s1468_s12 = sshll.u32 %s266_s10, 3  ;;  %s1366_s28 = scalar_lea.sflag [#allocation4], %s266_s10 }
 0x81f   : > { %s268_s14 = scalar_lea.vmem [#allocation5], %s1468_s12 }
 0x820   : > { %s1379_s17 = sshll.u32 %s268_s14, 4  ;;  %s1380_s17 = int_to_ptr.vmem [resolvable:$true] %s1379_s17 }
 0x821   : > { %s1740_s20 = scalar_lea.vmem %s1380_s17, 128  ;;  %p1747_p11 = scmp.lt.s32.totalorder %s1380_s17, %s1745_s29 }
 0x822   : > { %p1741_p6 = scmp.ne.s32.totalorder %s1380_s17, %s1740_s20  ;;  %p1748_p12 = scmp.lt.s32.totalorder %s1746_s9, %s1740_s20 }
 0x824   : > { %p1742_p9 = pnand %p1741_p6, %p1898_p5  ;;  %p1749_p13 = por %p1748_p12, %p1747_p11 }
 0x826   : > { %p1743_p10 = pneg %p1742_p9 }
 0x828   : > { %p1750_p0 = pnand %p1749_p13, %p1743_p10 }
 0x88b   : > { %v1203_v37 = vpop.permute.xlu1 %1202 }
 0x88c   : > { %1602 = vmatmul.mubr.msk.f32.vlgmr.msra.gmra.mxu1 %vm286_vm0, %v1203_v37 }
 0x88f   : > { %v1287_v41 = vpop.permute.xlu1 %1286 }
 0x94c   : > { %v1272_v27 = vpop.f32.mrf.mxu1 }
 0x94d   : > { %v1273_v38 = vadd.f32 %v1272_v27, %v1200_v36 }
 0x94e   : > { %v1603_v39 = vpop.f32.mrf.mxu1 }
 0x94f   : > { %v1276_v40 = vmax.f32 %v1273_v38, 0.0 }
 0x951   : > { %1621 = vmatmul.mubr.msk.f32.vlgmr.msra.gmra.mxu0 %vm1289_vm10, %v1276_v40 }
 0xa11   : > { %v1359_v42 = vpop.f32.mrf.mxu0 }
 0xa12   : > { %v1360_v43 = vadd.f32 %v1359_v42, %v1287_v41 }
 0xa13   : > { %v1622_v44 = vpop.f32.mrf.mxu0 }
 0xa14   : > { %v1363_v45 = vadd.f32 %v1360_v43, %v2078_v60 }
 0xa16   : > { %1364 = vst.msk [vmem:[%s268_s14] sm:$0xff] %vm286_vm0, %v1363_v45 }
 0xa17   : > { %1753 = shalt.err (!%p1750_p0)
}
 0xa18   : > { %s1754_s15 = scalar_lea.hbm %s1377_s26, 128  ;;  %s1758_s10 = scalar_lea.hbm %s2180_s6, 256 }
 0xa19   : > { %p1755_p1 = scmp.ne.s32.totalorder %s1377_s26, %s1754_s15  ;;  %p1759_p4 = scmp.lt.s32.totalorder %s1377_s26, %s2180_s6 }
 0xa1a   : > { %p1760_p7 = scmp.lt.s32.totalorder %s1758_s10, %s1754_s15 }
 0xa1b   : > { %p1756_p2 = pnand %p1755_p1, %p1898_p5 }
 0xa1c   : > { %p1761_p8 = por %p1760_p7, %p1759_p4 }
 0xa1d   : > { %p1757_p3 = pneg %p1756_p2 }
 0xa1f   : > { %p1762_p6 = pnand %p1761_p8, %p1757_p3 }
 0xa21   : > { %1765 = shalt.err (!%p1762_p6)
}
 0xa22   : > { %1627 = dma.vmem_to_hbm [thread:$0]  (%p1898_p5), %s1380_s17, 128, %s1377_s26, %s1366_s28  }
 0xa23 PF: > { %p1639_p9 = scmp.ge.s32.totalorder %s1804_s24, 2  ;;  %s1391_s14 = sand.u32 1, %s1792_s21  }
 0xa24   : > { %p2184_p10 = scmp.ne.s32.totalorder %s2182_s8, 0  ;;  %s1392_s18 = scalar_lea.sflag [#allocation4], %s1391_s14 }
 0xa26   : > { %p1634_p11 = pnand %p1639_p9, %p2184_p10 }
 0xa28   : > { %p1635_p12 = pneg %p1634_p11 }
 0xa2a   : > { %1787 = dma.done.wait (%p1635_p12), %s1392_s18, 128  }
 0xa2b   : > { %1789 = vsyncadd (%p1635_p12), %s1392_s18, 4294967168  ;;  %p17_p13 = scmp.ge.s32.totalorder %s1885_s27, 4   ;;  %s2185_s21 = smov %s1796_s22 }
 0xa2c   : > { %s2186_s22 = smov %s1800_s23  ;;  %s2187_s23 = smov %s1896_s30 }
 0xa2d   : > { %s2188_s24 = smov %s1885_s27  ;;  %19 = sbr.rel (!%p17_p13) target bundleno = 4 (0x4), region = 87 }
 0xa32   :  { %1397 = vsyncpa [#allocation3], 1 }
 0xa33   :  { %1399 = vsyncpa [#allocation3 + $0x1], 1 }
 0xa34   :  { %1400 = vsyncpa [#allocation4], 1 }
 0xa35   :  { %1402 = vsyncpa [#allocation4 + $0x1], 1 }

</bundles_post_ra>
